<compile_context>
chip_gen: v7x
topology: tpu7x:2x2x1
jax: 0.10.0
libtpu: 0.0.40
codegen_flags: <defaults>
</compile_context>

<pallas_src>
import math

import jax
import jax.numpy as jnp
from jax.experimental import pallas as pl
from jax.experimental.pallas import tpu as pltpu


def _round_up(n, m):
    return ((n + m - 1) // m) * m


def hnn_kernel(x_ref, w1_ref, bvec_ref, w2p_ref, w1m_t_ref, out_ref):
    cdt = w1_ref.dtype                     # elementwise compute dtype (f32 or bf16)
    H = w1_ref.shape[0]

    # ---- inputs ----
    x = x_ref[...]                         # [TB, D] batch-major
    xt = x.T.astype(cdt)                   # [D, TB] feature-major (XLU, idle slot)

    w1 = w1_ref[...]                       # [H, D]
    bvec = bvec_ref[...]                   # [H, 3]  == (b1 | b2 | w3)
    b1 = bvec[:, 0:1]                      # [H, 1]
    b2 = bvec[:, 1:2]                      # [H, 1]
    w3 = bvec[:, 2:3]                      # [H, 1]
    w2p = w2p_ref[...]                     # [2H, H] == (W2 ; W2^T)
    w2 = w2p[0:H, :]                       # [H, H]
    w2t = w2p[H:2 * H, :]                  # [H, H]  == W2^T
    w1m_t = w1m_t_ref[...]                 # [D, H]  == (W1 @ M)^T

    one = jnp.asarray(1.0, cdt)

    # ---- H_net forward pass (feature-major, batch on the lane axis) ----
    z1 = jnp.dot(w1, xt, preferred_element_type=jnp.float32).astype(cdt) + b1
    h1 = jnp.tanh(z1)                                                   # [H, TB]
    z2 = jnp.dot(w2, h1, preferred_element_type=jnp.float32).astype(cdt) + b2
    h2 = jnp.tanh(z2)                                                   # [H, TB]

    # ---- analytic dH/dx (backward through the tanh MLP), transposed ----
    g2 = (one - h2 * h2) * w3                                           # [H, TB]
    g1 = (one - h1 * h1) * jnp.dot(
        w2t, g2, preferred_element_type=jnp.float32).astype(cdt)        # [H, TB]

    # ---- out^T = M^T @ (W1^T @ G1) = (W1 @ M)^T @ G1 (mix folded in wrapper) ----
    ot = jnp.dot(w1m_t, g1, preferred_element_type=jnp.float32)         # [D, TB]
    out_ref[...] = ot.T.astype(out_ref.dtype)                           # [TB, D]


def init_params(key, input_dim=4, hidden=32):
    """Deterministic PyTorch-style (nn.Linear default) initialization."""
    k1, k2, k3, k4, k5, k6 = jax.random.split(key, 6)

    def lin(kw, kb, fan_in, fan_out):
        bound = 1.0 / math.sqrt(fan_in)
        w = jax.random.uniform(kw, (fan_out, fan_in), jnp.float32, -bound, bound)
        b = jax.random.uniform(kb, (fan_out,), jnp.float32, -bound, bound)
        return w, b

    w1, b1 = lin(k1, k2, input_dim, hidden)
    w2, b2 = lin(k3, k4, hidden, hidden)
    w3, b3 = lin(k5, k6, hidden, 1)
    return dict(
        w1=w1, b1=b1, w2=w2, b2=b2, w3=w3, b3=b3,
        # simple_HNN.__init__: torch.tensor([0.02]).sqrt()
        C1_dissip=jnp.array([math.sqrt(0.02)], jnp.float32),
        C2_dissip=jnp.array([math.sqrt(0.02)], jnp.float32),
    )


def simple_hnn_forward(params, t, x, *, block_b=4096, use_bf16_elementwise=False):
    del t  # `t` is unused in the reference forward pass
    c1sq = (params["C1_dissip"] ** 2)[0]
    c2sq = (params["C2_dissip"] ** 2)[0]

    # Mixing matrix M so that S_h = dH @ M (exactly the chunk/cat arithmetic):
    #   dq1dt =  dHdp1
    #   dp1dt = -dHdq1 - c1^2 * dHdp1
    #   dq2dt =  dHdp2
    #   dp2dt = -dHdq2 - c2^2 * dHdp2
    M = jnp.zeros((4, 4), jnp.float32)
    M = M.at[1, 0].set(1.0)
    M = M.at[0, 1].set(-1.0)
    M = M.at[1, 1].set(-c1sq)
    M = M.at[3, 2].set(1.0)
    M = M.at[2, 3].set(-1.0)
    M = M.at[3, 3].set(-c2sq)

    w1 = params["w1"]                                    # [H, D]
    w2 = params["w2"]                                    # [H, H]
    # Packed constant operands (fewer tiny DMAs / buffers, VMEM-resident):
    bvec = jnp.stack(
        [params["b1"], params["b2"], params["w3"].reshape(-1)], axis=1)  # [H, 3]
    w2pack = jnp.concatenate([w2, w2.T], axis=0)         # [2H, H]
    w1m_t = (w1 @ M).T                                   # [D, H]  (M folded)

    # Optional bf16 elementwise path (v6e/v7x only; dots stay f32-accumulated).
    cdt = jnp.bfloat16 if use_bf16_elementwise else jnp.float32
    w1_c, bvec_c = w1.astype(cdt), bvec.astype(cdt)
    w2pack_c, w1m_t_c = w2pack.astype(cdt), w1m_t.astype(cdt)

    B, D = x.shape
    H = w1.shape[0]

    # Batch tile: multiple of 128 (lane-dense compute), large by default, but
    # capped at ~half the batch so the grid has >=2 steps (v7x dual-TC sharding
    # + pipeline fill) whenever the batch allows.
    block_b = max(128, _round_up(block_b, 128))
    b128 = _round_up(B, 128)
    tb_cap = max(128, _round_up(b128 // 2, 128)) if b128 >= 256 else b128
    TB = min(block_b, tb_cap)
    Bp = _round_up(B, TB)
    # No wrapper relayouts: x stays batch-major.  Pad only if B is not a
    # multiple of TB (never for 128-aligned batches).
    x_in = x if Bp == B else jnp.pad(x, ((0, Bp - B), (0, 0)))

    const = lambda shape: pl.BlockSpec(shape, lambda i: (0, 0))

    out = pl.pallas_call(
        hnn_kernel,
        out_shape=jax.ShapeDtypeStruct((Bp, D), jnp.float32),
        grid_spec=pltpu.PrefetchScalarGridSpec(
            num_scalar_prefetch=0,
            grid=(Bp // TB,),
            in_specs=[
                pl.BlockSpec((TB, D), lambda i: (i, 0)),   # x, tiled over batch
                const((H, D)),                             # w1
                const((H, 3)),                             # (b1 | b2 | w3)
                const((2 * H, H)),                         # (W2 ; W2^T)
                const((D, H)),                             # (W1 @ M)^T
            ],
            out_specs=pl.BlockSpec((TB, D), lambda i: (i, 0)),
        ),
        compiler_params=pltpu.CompilerParams(
            dimension_semantics=("parallel",)),
    )(x_in, w1_c, bvec_c, w2pack_c, w1m_t_c)

    return out if Bp == B else out[:B]


# ---- pure-JAX reference (uses autodiff, mirrors the torch module exactly) ----
def _h_net(params, x):
    h1 = jnp.tanh(x @ params["w1"].T + params["b1"])
    h2 = jnp.tanh(h1 @ params["w2"].T + params["b2"])
    return h2 @ params["w3"].T + params["b3"]


def _reference(params, t, x):
    del t
    dH = jax.grad(lambda q: jnp.sum(_h_net(params, q)))(x)
    dHdq1, dHdp1, dHdq2, dHdp2 = jnp.split(dH, 4, axis=-1)
    c1 = params["C1_dissip"] ** 2
    c2 = params["C2_dissip"] ** 2
    return jnp.concatenate(
        [dHdp1, -dHdq1 - c1 * dHdp1, dHdp2, -dHdq2 - c2 * dHdp2], axis=-1)


if __name__ == "__main__":
    key = jax.random.PRNGKey(0)
    kp, kx = jax.random.split(key)

    input_dim, hidden, batch = 4, 32, 512
    params = init_params(kp, input_dim=input_dim, hidden=hidden)
    x = jax.random.normal(kx, (batch, input_dim), jnp.float32)
    t = jnp.zeros((), jnp.float32)

    # With B=512 the TB cap yields TB=256 -> grid=(2,): exercises the
    # double-buffered pipeline and v7x dual-TC sharding, with no pad/transpose
    # ops outside the kernel.
    out = jax.block_until_ready(simple_hnn_forward(params, t, x))
    ref = _reference(params, t, x)
    assert out.shape == (batch, input_dim) and out.dtype == jnp.float32
    assert jnp.allclose(out, ref, atol=1e-5, rtol=1e-4), (
        float(jnp.max(jnp.abs(out - ref))))
    print("KERNEL_OK")
</pallas_src>

<mosaic_0001>
module attributes {stable_mosaic.version = 11 : i64} {
  func.func @hnn_kernel(%arg0: i32, %arg1: memref<256x4xf32, #tpu.memory_space<vmem>>, %arg2: memref<32x4xf32, #tpu.memory_space<vmem>>, %arg3: memref<32x3xf32, #tpu.memory_space<vmem>>, %arg4: memref<64x32xf32, #tpu.memory_space<vmem>>, %arg5: memref<4x32xf32, #tpu.memory_space<vmem>>, %arg6: memref<256x4xf32, #tpu.memory_space<vmem>>) attributes {dimension_semantics = [#tpu.dimension_semantics<parallel>], iteration_bounds = array<i64: 2>, scalar_prefetch = 0 : i64, scratch_operands = 0 : i64, tpu.core_type = #tpu.core_type<tc>, window_params = [{transform_indices = @transform_0, window_bounds = array<i64: 256, 4>}, {pipeline_mode = #tpu.pipeline_mode<synchronous>, transform_indices = @transform_1, window_bounds = array<i64: 32, 4>}, {pipeline_mode = #tpu.pipeline_mode<synchronous>, transform_indices = @transform_2, window_bounds = array<i64: 32, 3>}, {pipeline_mode = #tpu.pipeline_mode<synchronous>, transform_indices = @transform_3, window_bounds = array<i64: 64, 32>}, {pipeline_mode = #tpu.pipeline_mode<synchronous>, transform_indices = @transform_4, window_bounds = array<i64: 4, 32>}, {transform_indices = @transform_5, window_bounds = array<i64: 256, 4>}]} {
    %c0 = arith.constant 0 : index
    %c0_0 = arith.constant 0 : index
    %0 = vector.load %arg1[%c0, %c0_0] : memref<256x4xf32, #tpu.memory_space<vmem>>, vector<256x4xf32>
    %1 = tpu.transpose %0, [1, 0] : vector<256x4xf32> -> vector<4x256xf32>
    %c0_1 = arith.constant 0 : index
    %c0_2 = arith.constant 0 : index
    %2 = vector.load %arg2[%c0_1, %c0_2] : memref<32x4xf32, #tpu.memory_space<vmem>>, vector<32x4xf32>
    %c0_3 = arith.constant 0 : index
    %c0_4 = arith.constant 0 : index
    %3 = vector.load %arg3[%c0_3, %c0_4] : memref<32x3xf32, #tpu.memory_space<vmem>>, vector<32x3xf32>
    %4 = vector.extract_strided_slice %3 {offsets = [0, 0], sizes = [32, 1], strides = [1, 1]} : vector<32x3xf32> to vector<32x1xf32>
    %5 = vector.extract_strided_slice %3 {offsets = [0, 1], sizes = [32, 1], strides = [1, 1]} : vector<32x3xf32> to vector<32x1xf32>
    %6 = vector.extract_strided_slice %3 {offsets = [0, 2], sizes = [32, 1], strides = [1, 1]} : vector<32x3xf32> to vector<32x1xf32>
    %c0_5 = arith.constant 0 : index
    %c0_6 = arith.constant 0 : index
    %7 = vector.load %arg4[%c0_5, %c0_6] : memref<64x32xf32, #tpu.memory_space<vmem>>, vector<64x32xf32>
    %8 = vector.extract_strided_slice %7 {offsets = [0, 0], sizes = [32, 32], strides = [1, 1]} : vector<64x32xf32> to vector<32x32xf32>
    %9 = vector.extract_strided_slice %7 {offsets = [32, 0], sizes = [32, 32], strides = [1, 1]} : vector<64x32xf32> to vector<32x32xf32>
    %c0_7 = arith.constant 0 : index
    %c0_8 = arith.constant 0 : index
    %10 = vector.load %arg5[%c0_7, %c0_8] : memref<4x32xf32, #tpu.memory_space<vmem>>, vector<4x32xf32>
    %cst = arith.constant dense<0.000000e+00> : vector<32x256xf32>
    %11 = tpu.matmul %2, %1, %cst {dimension_numbers = #tpu.dot_dimension_numbers<[1], [0], [0], [1], [0, 0, 1, 1], [], []>} : vector<32x4xf32>, vector<4x256xf32>, vector<32x256xf32> -> vector<32x256xf32>
    %12 = vector.broadcast %4 : vector<32x1xf32> to vector<32x256xf32>
    %13 = arith.addf %11, %12 : vector<32x256xf32>
    %14 = math.tanh %13 : vector<32x256xf32>
    %cst_9 = arith.constant dense<0.000000e+00> : vector<32x256xf32>
    %15 = tpu.matmul %8, %14, %cst_9 {dimension_numbers = #tpu.dot_dimension_numbers<[1], [0], [0], [1], [0, 0, 1, 1], [], []>} : vector<32x32xf32>, vector<32x256xf32>, vector<32x256xf32> -> vector<32x256xf32>
    %16 = vector.broadcast %5 : vector<32x1xf32> to vector<32x256xf32>
    %17 = arith.addf %15, %16 : vector<32x256xf32>
    %18 = math.tanh %17 : vector<32x256xf32>
    %19 = arith.mulf %18, %18 : vector<32x256xf32>
    %cst_10 = arith.constant 1.000000e+00 : f32
    %20 = vector.broadcast %cst_10 : f32 to vector<32x256xf32>
    %21 = arith.subf %20, %19 : vector<32x256xf32>
    %22 = vector.broadcast %6 : vector<32x1xf32> to vector<32x256xf32>
    %23 = arith.mulf %21, %22 : vector<32x256xf32>
    %24 = arith.mulf %14, %14 : vector<32x256xf32>
    %cst_11 = arith.constant 1.000000e+00 : f32
    %25 = vector.broadcast %cst_11 : f32 to vector<32x256xf32>
    %26 = arith.subf %25, %24 : vector<32x256xf32>
    %cst_12 = arith.constant dense<0.000000e+00> : vector<32x256xf32>
    %27 = tpu.matmul %9, %23, %cst_12 {dimension_numbers = #tpu.dot_dimension_numbers<[1], [0], [0], [1], [0, 0, 1, 1], [], []>} : vector<32x32xf32>, vector<32x256xf32>, vector<32x256xf32> -> vector<32x256xf32>
    %28 = arith.mulf %26, %27 : vector<32x256xf32>
    %cst_13 = arith.constant dense<0.000000e+00> : vector<4x256xf32>
    %29 = tpu.matmul %10, %28, %cst_13 {dimension_numbers = #tpu.dot_dimension_numbers<[1], [0], [0], [1], [0, 0, 1, 1], [], []>} : vector<4x32xf32>, vector<32x256xf32>, vector<4x256xf32> -> vector<4x256xf32>
    %30 = tpu.transpose %29, [1, 0] : vector<4x256xf32> -> vector<256x4xf32>
    %c0_14 = arith.constant 0 : index
    %c0_15 = arith.constant 0 : index
    %31 = vector.load %arg6[%c0_14, %c0_15] : memref<256x4xf32, #tpu.memory_space<vmem>>, vector<256x4xf32>
    tpu.vector_store %arg6[%c0_14, %c0_15], %30 {strides = array<i32>} : memref<256x4xf32, #tpu.memory_space<vmem>>, vector<256x4xf32>,
    return
  }
  func.func @transform_0(%arg0: i32) -> (i32, i32) {
    %c0_i32 = arith.constant 0 : i32
    %c0_i32_0 = arith.constant 0 : i32
    return %arg0, %c0_i32 : i32, i32
  }
  func.func @transform_1(%arg0: i32) -> (i32, i32) {
    %c0_i32 = arith.constant 0 : i32
    %c0_i32_0 = arith.constant 0 : i32
    %c0_i32_1 = arith.constant 0 : i32
    return %c0_i32, %c0_i32_0 : i32, i32
  }
  func.func @transform_2(%arg0: i32) -> (i32, i32) {
    %c0_i32 = arith.constant 0 : i32
    %c0_i32_0 = arith.constant 0 : i32
    %c0_i32_1 = arith.constant 0 : i32
    return %c0_i32, %c0_i32_0 : i32, i32
  }
  func.func @transform_3(%arg0: i32) -> (i32, i32) {
    %c0_i32 = arith.constant 0 : i32
    %c0_i32_0 = arith.constant 0 : i32
    %c0_i32_1 = arith.constant 0 : i32
    return %c0_i32, %c0_i32_0 : i32, i32
  }
  func.func @transform_4(%arg0: i32) -> (i32, i32) {
    %c0_i32 = arith.constant 0 : i32
    %c0_i32_0 = arith.constant 0 : i32
    %c0_i32_1 = arith.constant 0 : i32
    return %c0_i32, %c0_i32_0 : i32, i32
  }
  func.func @transform_5(%arg0: i32) -> (i32, i32) {
    %c0_i32 = arith.constant 0 : i32
    %c0_i32_0 = arith.constant 0 : i32
    return %arg0, %c0_i32 : i32, i32
  }
}

</mosaic_0001>

<bundles_post_ra>
// kernel: tpu_custom_call.1
= control target key start
LH: loop header
LB: loop body
LE: loop exit
PB: predicated region body
PF: predicated region fallthrough
CT: control target
= control target key end

     0   :  { %s1280_s18 = smov 0   ;;  %s1583_s0 = inlined_call_operand.vmem [shape: f32[512,4], index: 0, kind: input, shape index: {}]   ;;  %s1584_s1 = inlined_call_operand.vmem [shape: f32[32,4], index: 1, kind: input, shape index: {}]   ;;  %s1585_s2 = inlined_call_operand.vmem [shape: f32[32,3], index: 2, kind: input, shape index: {}]   ;;  %s1586_s3 = inlined_call_operand.vmem [shape: f32[64,32], index: 3, kind: input, shape index: {}]   ;;  %s1587_s4 = inlined_call_operand.vmem [shape: f32[4,32], index: 4, kind: input, shape index: {}]   ;;  %s1588_s5 = inlined_call_operand.vmem [shape: f32[512,4], index: 5, kind: output, shape index: {}]  }
   0x1 LB: > { %s1020_s19 = sadd.s32 4294967295, %s1244_s18   ;;  %p1024_p0 = scmp.ge.s32.totalorder %s1244_s18, 1  ;;  %s1244_s18 = sphi %s1280_s18, %s15_s18  }
   0x2   : > { %p188_p1 = scmp.lt.s32.totalorder %s1244_s18, 3 }
   0x4   : > { %p189_p2 = pnand %p1024_p0, %p188_p1 }
   0x5   : > { %s1025_s20 = sshll.u32 (!%p189_p2), %s1020_s19, 5  ;;  %vm297_vm0 = vcmask (!%p189_p2), 31744   ;;  %v1291_v0 = vld [vmem:[%s1584_s1] sm:$0xff] (!%p189_p2)  ;;  %v1246_v1 = vmov (!%p189_p2), 0   ;;  %v1304_v3 = vld [vmem:[%s1585_s2 + $0x10] sm:$0xff] (!%p189_p2)  ;;  %v1311_v4 = vld [vmem:[%s1585_s2 + $0x8] sm:$0xff] (!%p189_p2) }
   0x6   : > { %192 = sbr.rel (%p189_p2) target bundleno = 1213 (0x4bd), region = 40  ;;  %p217_p3 = scmp.lt.s32.totalorder (!%p189_p2), %s1025_s20, 63  ;;  %1108 = vmatprep.mubr.msk.f32.mxu0 (!%p189_p2), %vm297_vm0, %v1291_v0  ;;  %1200 = vset.pattern.permute.xlu0 (!%p189_p2), %v1246_v1  ;;  %v1298_v2 = vld [vmem:[%s1585_s2] sm:$0xff] (!%p189_p2)  ;;  %v1317_v5 = vld [vmem:[%s1585_s2 + $0x18] sm:$0xff] (!%p189_p2)  ;;  %vm1329_vm1 = vmpackc.low (!%p189_p2), %vm297_vm0, %vm297_vm0  ;;  %v1247_v58 = vmov (!%p189_p2), 0.0   ;;  %v1248_v59 = vmov (!%p189_p2), 1  }
   0x7   : > { %279 = vperm.xlu0 (!%p189_p2), %1200, %v1298_v2   ;;  %1201 = vset.pattern.permute.xlu1 (!%p189_p2), %v1246_v1  ;;  %v261_v55 = vld [vmem:[%s1584_s1 + $0x8] sm:$0xff] (!%p189_p2)  ;;  %v262_v56 = vld [vmem:[%s1584_s1 + $0x10] sm:$0xff] (!%p189_p2)  ;;  %v263_v57 = vld [vmem:[%s1584_s1 + $0x18] sm:$0xff] (!%p189_p2)  ;;  %v1249_v60 = vmov (!%p189_p2), 2   ;;  %vm519_vm2 = vcmask (!%p189_p2), 261120  }
   0x8   : > { %289 = vperm.xlu1 (!%p189_p2), %1201, %v1304_v3   ;;  %596 = vmatprep.mubr.f32.mxu1 (!%p189_p2), %v1247_v58 }
   0xb   : > { %284 = vperm.xlu0 (!%p189_p2), %1200, %v1311_v4  }
   0xc   : > { %294 = vperm.xlu1 (!%p189_p2), %1201, %v1317_v5  }
   0xd   : > { %s1592_s20 = smov (!%p217_p3, %s1025_s20), 63 }
   0xe   : > { %s1026_s6 = sshll.u32 %s1592_s20, 3 }
   0xf   : > { %s1325_s9 = scalar_lea.vmem %s1583_s0, %s1026_s6  ;;  %1202 = vset.pattern.permute.xlu0 %v1248_v59  ;;  %s1514_s14 = scalar_lea.vmem %s1588_s5, %s1026_s6 }
  0x10   : > { %v244_v7 = vld [vmem:[%s1325_s9 + $0x80] sm:$0xff]  ;;  %v245_v8 = vld [vmem:[%s1325_s9 + $0x88] sm:$0xff]  ;;  %v246_v12 = vld [vmem:[%s1325_s9 + $0x90] sm:$0xff]  ;;  %1203 = vset.pattern.permute.xlu1 %v1248_v59  ;;  %504 = vperm.xlu0 %1202, %v1298_v2  }
  0x11   : > { %v228_v9 = vld [vmem:[%s1325_s9] sm:$0xff]  ;;  %v1116_v10 = vpack.c.bf16 %v245_v8, %v244_v7  ;;  %v229_v11 = vld [vmem:[%s1325_s9 + $0x8] sm:$0xff]  ;;  %v247_v13 = vld [vmem:[%s1325_s9 + $0x98] sm:$0xff]  ;;  %508 = vperm.xlu1 %1203, %v1311_v4  }
  0x12   : > { %v1119_v14 = vpack.c.bf16 %v229_v11, %v228_v9  ;;  %v1122_v15 = vpack.c.bf16 %v247_v13, %v246_v12  ;;  %v230_v16 = vld [vmem:[%s1325_s9 + $0x10] sm:$0xff]  ;;  %v231_v17 = vld [vmem:[%s1325_s9 + $0x18] sm:$0xff]  ;;  %v248_v18 = vld [vmem:[%s1325_s9 + $0xa0] sm:$0xff] }
  0x13   : > { %1118 = vmatprep.subr.msk.bf16.mxu0 %vm1329_vm1, %v1116_v10  ;;  %v249_v19 = vld [vmem:[%s1325_s9 + $0xa8] sm:$0xff]  ;;  %v1125_v20 = vpack.c.bf16 %v231_v17, %v230_v16  ;;  %v232_v22 = vld [vmem:[%s1325_s9 + $0x20] sm:$0xff]  ;;  %v250_v24 = vld [vmem:[%s1325_s9 + $0xb0] sm:$0xff] }
  0x14   : > { %1121 = vmatpush3.bf16.xpose.msk.msra.mxu0 %vm1329_vm1, %v1119_v14  ;;  %v1128_v21 = vpack.c.bf16 %v249_v19, %v248_v18  ;;  %v233_v23 = vld [vmem:[%s1325_s9 + $0x28] sm:$0xff]  ;;  %v251_v25 = vld [vmem:[%s1325_s9 + $0xb8] sm:$0xff]  ;;  %v234_v28 = vld [vmem:[%s1325_s9 + $0x30] sm:$0xff]  ;;  %516 = vperm.xlu0 %1202, %v1317_v5  }
  0x15   : > { %1124 = vmatprep.subr.msk.bf16.mxu0 %vm1329_vm1, %v1122_v15  ;;  %v1131_v26 = vpack.c.bf16 %v233_v23, %v232_v22  ;;  %v1134_v27 = vpack.c.bf16 %v251_v25, %v250_v24  ;;  %v235_v29 = vld [vmem:[%s1325_s9 + $0x38] sm:$0xff]  ;;  %v252_v30 = vld [vmem:[%s1325_s9 + $0xc0] sm:$0xff]  ;;  %v253_v31 = vld [vmem:[%s1325_s9 + $0xc8] sm:$0xff]  ;;  %512 = vperm.xlu1 %1203, %v1304_v3  }
  0x16   : > { %v1137_v32 = vpack.c.bf16 %v235_v29, %v234_v28  ;;  %v1140_v33 = vpack.c.bf16 %v253_v31, %v252_v30  ;;  %v236_v34 = vld [vmem:[%s1325_s9 + $0x40] sm:$0xff]  ;;  %v237_v35 = vld [vmem:[%s1325_s9 + $0x48] sm:$0xff]  ;;  %v254_v36 = vld [vmem:[%s1325_s9 + $0xd0] sm:$0xff] }
  0x17   : > { %v255_v37 = vld [vmem:[%s1325_s9 + $0xd8] sm:$0xff]  ;;  %v1143_v38 = vpack.c.bf16 %v237_v35, %v236_v34  ;;  %v238_v40 = vld [vmem:[%s1325_s9 + $0x50] sm:$0xff]  ;;  %v256_v42 = vld [vmem:[%s1325_s9 + $0xe0] sm:$0xff] }
  0x18   : > { %v1146_v39 = vpack.c.bf16 %v255_v37, %v254_v36  ;;  %v239_v41 = vld [vmem:[%s1325_s9 + $0x58] sm:$0xff]  ;;  %v257_v43 = vld [vmem:[%s1325_s9 + $0xe8] sm:$0xff]  ;;  %v240_v46 = vld [vmem:[%s1325_s9 + $0x60] sm:$0xff]  ;;  %1205 = vset.pattern.permute.xlu0 %v1249_v60 }
  0x19   : > { %v1149_v44 = vpack.c.bf16 %v239_v41, %v238_v40  ;;  %v1152_v45 = vpack.c.bf16 %v257_v43, %v256_v42  ;;  %v241_v47 = vld [vmem:[%s1325_s9 + $0x68] sm:$0xff]  ;;  %v258_v48 = vld [vmem:[%s1325_s9 + $0xf0] sm:$0xff]  ;;  %v259_v49 = vld [vmem:[%s1325_s9 + $0xf8] sm:$0xff]  ;;  %1204 = vset.pattern.permute.xlu1 %v1249_v60  ;;  %650 = vperm.xlu0 %1205, %v1311_v4  }
  0x1a   : > { %v1155_v50 = vpack.c.bf16 %v241_v47, %v240_v46  ;;  %v1158_v51 = vpack.c.bf16 %v259_v49, %v258_v48  ;;  %v242_v52 = vld [vmem:[%s1325_s9 + $0x70] sm:$0xff]  ;;  %v243_v53 = vld [vmem:[%s1325_s9 + $0x78] sm:$0xff]  ;;  %646 = vperm.xlu1 %1204, %v1298_v2   ;;  %v268_v29 = vld [vmem:[%s1586_s3] sm:$0xff] }
  0x1b   : > { %v1161_v54 = vpack.c.bf16 %v243_v53, %v242_v52  ;;  %v269_v30 = vld [vmem:[%s1586_s3 + $0x8] sm:$0xff]  ;;  %v270_v31 = vld [vmem:[%s1586_s3 + $0x10] sm:$0xff] }
  0x1c   : > { %1127 = vmatpush3.bf16.xpose.msk.msra.mxu0 %vm1329_vm1, %v1125_v20 }
  0x1d   : > { %1130 = vmatprep.subr.msk.bf16.mxu0 %vm1329_vm1, %v1128_v21 }
  0x1e   : > { %654 = vperm.xlu1 %1204, %v1304_v3  }
  0x22   : > { %658 = vperm.xlu1 %1204, %v1317_v5  }
  0x24   : > { %1133 = vmatpush3.bf16.xpose.msk.msra.mxu0 %vm1329_vm1, %v1131_v26 }
  0x25   : > { %1136 = vmatprep.subr.msk.bf16.mxu0 %vm1329_vm1, %v1134_v27 }
  0x2c   : > { %1139 = vmatpush3.bf16.xpose.msk.msra.mxu0 %vm1329_vm1, %v1137_v32  ;;  %v271_v32 = vld [vmem:[%s1586_s3 + $0x18] sm:$0xff] }
  0x2d   : > { %1142 = vmatprep.subr.msk.bf16.mxu0 %vm1329_vm1, %v1140_v33 }
  0x34   : > { %1145 = vmatpush3.bf16.xpose.msk.msra.mxu0 %vm1329_vm1, %v1143_v38 }
  0x35   : > { %1148 = vmatprep.subr.msk.bf16.mxu0 %vm1329_vm1, %v1146_v39 }
  0x3c   : > { %1151 = vmatpush3.bf16.xpose.msk.msra.mxu0 %vm1329_vm1, %v1149_v44 }
  0x3d   : > { %1154 = vmatprep.subr.msk.bf16.mxu0 %vm1329_vm1, %v1152_v45 }
  0x44   : > { %1157 = vmatpush3.bf16.xpose.msk.msra.mxu0 %vm1329_vm1, %v1155_v50 }
  0x45   : > { %1160 = vmatprep.subr.msk.bf16.mxu0 %vm1329_vm1, %v1158_v51 }
  0x4c   : > { %1163 = vmatpush3.bf16.xpose.msk.msra.mxu0 %vm1329_vm1, %v1161_v54 }
  0x53   : > { %1109 = vmatmul.mubr.msk.f32.vlgmr.msra.gmra.mrb[0].mxu0 %vm297_vm0, %v1291_v0 }
  0x54   : > { %1110 = vmatprep.mubr.msk.f32.mxu0 %vm297_vm0, %v261_v55 }
  0x57   : > { %1111 = vmatmul.mubr.msk.f32.gmra.mrb[2].mxu0 %vm297_vm0, %v261_v55 }
  0x58   : > { %1112 = vmatprep.mubr.msk.f32.mxu0 %vm297_vm0, %v262_v56 }
  0x5b   : > { %1113 = vmatmul.mubr.msk.f32.gmra.mrb[4].mxu0 %vm297_vm0, %v262_v56 }
  0x5c   : > { %1114 = vmatprep.mubr.msk.f32.mxu0 %vm297_vm0, %v263_v57 }
  0x5f   : > { %1115 = vmatmul.mubr.msk.f32.gmra.mrb[6].mxu0 %vm297_vm0, %v263_v57 }
  0x86   : > { %v280_v61 = vpop.permute.xlu0 %279 }
  0x87   : > { %v290_v10 = vpop.permute.xlu1 %289 }
  0x8a   : > { %v285_v6 = vpop.permute.xlu0 %284 }
  0x8b   : > { %v295_v5 = vpop.permute.xlu1 %294 }
  0x8f   : > { %v505_v33 = vpop.permute.xlu0 %504 }
  0x90   : > { %v509_v35 = vpop.permute.xlu1 %508 }
  0x93   : > { %v517_v48 = vpop.permute.xlu0 %516 }
  0x94   : > { %v513_v42 = vpop.permute.xlu1 %512 }
  0x99   : > { %v647_v59 = vpop.permute.xlu1 %646 }
 0x126   : > { %v472_v62 = vpop.f32.mrb[0].mxu0 }
 0x127   : > { %v473_v63 = vadd.f32 %v472_v62, %v280_v61  ;;  %v474_v0 = vpop.f32.mrb[1].mxu0 }
 0x128   : > { %v475_v1 = vadd.f32 %v474_v0, %v280_v61 }
 0x129   : > { %1206 = vtanh.f32 %v473_v63 }
 0x12a   : > { %v478_v7 = vpop.f32.mrb[2].mxu0  ;;  %1208 = vtanh.f32 %v475_v1  ;;  %v651_v1 = vpop.permute.xlu0 %650 }
 0x12b   : > { %v479_v8 = vadd.f32 %v478_v7, %v285_v6  ;;  %v480_v9 = vpop.f32.mrb[3].mxu0 }
 0x12c   : > { %v481_v11 = vadd.f32 %v480_v9, %v285_v6 }
 0x12d   : > { %1210 = vtanh.f32 %v479_v8 }
 0x12e   : > { %1212 = vtanh.f32 %v481_v11  ;;  %v484_v2 = vpop.f32.mrb[4].mxu0 }
 0x12f   : > { %v485_v4 = vadd.f32 %v484_v2, %v290_v10  ;;  %v486_v3 = vpop.f32.mrb[5].mxu0 }
 0x130   : > { %v487_v12 = vadd.f32 %v486_v3, %v290_v10 }
 0x131   : > { %1214 = vtanh.f32 %v485_v4 }
 0x132   : > { %v490_v13 = vpop.f32.mrb[6].mxu0  ;;  %1216 = vtanh.f32 %v487_v12  ;;  %v655_v12 = vpop.permute.xlu1 %654 }
 0x133   : > { %v491_v14 = vadd.f32 %v490_v13, %v295_v5  ;;  %v492_v15 = vpop.f32.mrb[7].mxu0  ;;  %v1425_v17 = vpop.eup %1206 }
 0x134   : > { %v493_v16 = vadd.f32 %v492_v15, %v295_v5  ;;  %v1427_v18 = vpop.eup %1208 }
 0x135   : > { %1218 = vtanh.f32 %v491_v14 }
 0x136   : > { %1220 = vtanh.f32 %v493_v16 }
 0x137   : > { %v1429_v19 = vpop.eup %1210 }
 0x138   : > { %v1431_v20 = vpop.eup %1212  ;;  %v1166_v21 = vpack.c.bf16 %v1429_v19, %v1425_v17 }
 0x139   : > { %v1164_v22 = vpack.c.bf16 %v1431_v20, %v1427_v18 }
 0x13b   : > { %1165 = vmatprep.subr.bf16.mxu1 %v1164_v22  ;;  %v1437_v23 = vpop.eup %1214 }
 0x13c   : > { %1167 = vmatpush1.bf16.msra.mxu1 %v1166_v21  ;;  %v1439_v24 = vpop.eup %1216 }
 0x13f   : > { %v1441_v25 = vpop.eup %1218 }
 0x140   : > { %v1443_v26 = vpop.eup %1220  ;;  %v1170_v27 = vpack.c.bf16 %v1441_v25, %v1437_v23 }
 0x141   : > { %v1168_v28 = vpack.c.bf16 %v1443_v26, %v1439_v24 }
 0x143   : > { %1169 = vmatprep.subr.bf16.mxu1 %v1168_v28 }
 0x144   : > { %1171 = vmatpush1.bf16.msra.mxu1 %v1170_v27 }
 0x147   : > { %1065 = vmatmul.mubr.msk.f32.vlgmr.msra.gmra.mrb[0].mxu1 %vm519_vm2, %v268_v29 }
 0x148   : > { %602 = vmatprep.mubr.f32.mxu1 %v1247_v58 }
 0x14b   : > { %1066 = vmatmul.mubr.msk.f32.gmra.mrb[2].mxu1 %vm519_vm2, %v269_v30  ;;  %v659_v30 = vpop.permute.xlu1 %658 }
 0x14c   : > { %608 = vmatprep.mubr.f32.mxu1 %v1247_v58 }
 0x14f   : > { %1067 = vmatmul.mubr.msk.f32.gmra.mrb[4].mxu1 %vm519_vm2, %v270_v31 }
 0x150   : > { %614 = vmatprep.mubr.f32.mxu1 %v1247_v58 }
 0x153   : > { %1068 = vmatmul.mubr.msk.f32.gmra.mrb[6].mxu1 %vm519_vm2, %v271_v32 }
 0x154   : > { %761 = vmatprep.mubr.f32.mxu1 %v1247_v58 }
 0x21a   : > { %v598_v34 = vpop.f32.mrb[0].mxu1 }
 0x21b   : > { %v599_v36 = vadd.f32 %v598_v34, %v505_v33  ;;  %v600_v37 = vpop.f32.mrb[1].mxu1 }
 0x21c   : > { %v601_v38 = vadd.f32 %v600_v37, %v505_v33 }
 0x21d   : > { %1222 = vtanh.f32 %v599_v36 }
 0x21e   : > { %1224 = vtanh.f32 %v601_v38  ;;  %v604_v39 = vpop.f32.mrb[2].mxu1  ;;  %v272_v38 = vld [vmem:[%s1586_s3 + $0x20] sm:$0xff] }
 0x21f   : > { %v605_v40 = vadd.f32 %v604_v39, %v509_v35  ;;  %v606_v41 = vpop.f32.mrb[3].mxu1  ;;  %v273_v39 = vld [vmem:[%s1586_s3 + $0x28] sm:$0xff] }
 0x220   : > { %v607_v43 = vadd.f32 %v606_v41, %v509_v35  ;;  %v275_v41 = vld [vmem:[%s1586_s3 + $0x38] sm:$0xff] }
 0x221   : > { %1226 = vtanh.f32 %v605_v40  ;;  %v274_v40 = vld [vmem:[%s1586_s3 + $0x30] sm:$0xff] }
 0x222   : > { %1228 = vtanh.f32 %v607_v43  ;;  %v610_v44 = vpop.f32.mrb[4].mxu1  ;;  %v670_v43 = vmul.f32 %v1427_v18, %v1427_v18  ;;  %v674_v18 = vmul.f32 %v1439_v24, %v1439_v24 }
 0x223   : > { %v611_v45 = vadd.f32 %v610_v44, %v513_v42  ;;  %v612_v46 = vpop.f32.mrb[5].mxu1 }
 0x224   : > { %v613_v47 = vadd.f32 %v612_v46, %v513_v42  ;;  %v669_v42 = vmul.f32 %v1425_v17, %v1425_v17 }
 0x225   : > { %1230 = vtanh.f32 %v611_v45  ;;  %v671_v45 = vmul.f32 %v1429_v19, %v1429_v19 }
 0x226   : > { %1232 = vtanh.f32 %v613_v47  ;;  %v616_v49 = vpop.f32.mrb[6].mxu1  ;;  %v677_v44 = vsub.f32 1.0, %v669_v42  ;;  %v678_v47 = vsub.f32 1.0, %v670_v43 }
 0x227   : > { %v1223_v50 = vpop.eup %1222  ;;  %v617_v51 = vadd.f32 %v616_v49, %v517_v48  ;;  %v618_v52 = vpop.f32.mrb[7].mxu1 }
 0x228   : > { %v1225_v53 = vpop.eup %1224  ;;  %v629_v54 = vmul.f32 %v1223_v50, %v1223_v50  ;;  %v619_v55 = vadd.f32 %v618_v52, %v517_v48  ;;  %v672_v48 = vmul.f32 %v1431_v20, %v1431_v20  ;;  %v679_v52 = vsub.f32 1.0, %v671_v45 }
 0x229   : > { %v630_v56 = vmul.f32 %v1225_v53, %v1225_v53  ;;  %1234 = vtanh.f32 %v617_v51  ;;  %v675_v20 = vmul.f32 %v1441_v25, %v1441_v25 }
 0x22a   : > { %1236 = vtanh.f32 %v619_v55  ;;  %v637_v62 = vsub.f32 1.0, %v629_v54  ;;  %v680_v53 = vsub.f32 1.0, %v672_v48 }
 0x22b   : > { %v1227_v57 = vpop.eup %1226  ;;  %v638_v0 = vsub.f32 1.0, %v630_v56  ;;  %v683_v24 = vsub.f32 1.0, %v675_v20 }
 0x22c   : > { %v1229_v60 = vpop.eup %1228  ;;  %v631_v61 = vmul.f32 %v1227_v57, %v1227_v57  ;;  %v661_v11 = vmul.f32 %v647_v59, %v637_v62  ;;  %v676_v62 = vmul.f32 %v1443_v26, %v1443_v26  ;;  %v276_v26 = vld [vmem:[%s1587_s4] sm:$0xf] }
 0x22d   : > { %v632_v63 = vmul.f32 %v1229_v60, %v1229_v60  ;;  %v662_v3 = vmul.f32 %v647_v59, %v638_v0 }
 0x22e   : > { %v639_v6 = vsub.f32 1.0, %v631_v61  ;;  %v682_v61 = vsub.f32 1.0, %v674_v18 }
 0x22f   : > { %v1231_v7 = vpop.eup %1230  ;;  %v640_v8 = vsub.f32 1.0, %v632_v63 }
 0x230   : > { %v1233_v9 = vpop.eup %1232  ;;  %v633_v10 = vmul.f32 %v1231_v7, %v1231_v7  ;;  %v663_v2 = vmul.f32 %v651_v1, %v639_v6  ;;  %v684_v6 = vsub.f32 1.0, %v676_v62 }
 0x231   : > { %v634_v4 = vmul.f32 %v1233_v9, %v1233_v9  ;;  %v664_v5 = vmul.f32 %v651_v1, %v640_v8 }
 0x232   : > { %v1174_v13 = vpack.c.bf16 %v663_v2, %v661_v11  ;;  %v641_v22 = vsub.f32 1.0, %v633_v10 }
 0x233   : > { %v1235_v14 = vpop.eup %1234  ;;  %v1172_v15 = vpack.c.bf16 %v664_v5, %v662_v3  ;;  %v642_v28 = vsub.f32 1.0, %v634_v4 }
 0x234   : > { %v1237_v16 = vpop.eup %1236  ;;  %v635_v21 = vmul.f32 %v1235_v14, %v1235_v14  ;;  %v665_v32 = vmul.f32 %v655_v12, %v641_v22 }
 0x235   : > { %v636_v27 = vmul.f32 %v1237_v16, %v1237_v16  ;;  %1173 = vmatprep.subr.bf16.mxu1 %v1172_v15  ;;  %v666_v34 = vmul.f32 %v655_v12, %v642_v28 }
 0x236   : > { %v643_v29 = vsub.f32 1.0, %v635_v21  ;;  %1175 = vmatpush1.bf16.msra.mxu1 %v1174_v13 }
 0x237   : > { %v644_v31 = vsub.f32 1.0, %v636_v27 }
 0x238   : > { %v667_v33 = vmul.f32 %v659_v30, %v643_v29 }
 0x239   : > { %v668_v35 = vmul.f32 %v659_v30, %v644_v31 }
 0x23a   : > { %v1178_v36 = vpack.c.bf16 %v667_v33, %v665_v32 }
 0x23b   : > { %v1176_v37 = vpack.c.bf16 %v668_v35, %v666_v34 }
 0x23d   : > { %1177 = vmatprep.subr.bf16.mxu1 %v1176_v37 }
 0x23e   : > { %1179 = vmatpush1.bf16.msra.mxu1 %v1178_v36 }
 0x241   : > { %1069 = vmatmul.mubr.msk.f32.vlgmr.msra.gmra.mrb[8].mxu1 %vm519_vm2, %v272_v38 }
 0x242   : > { %767 = vmatprep.mubr.f32.mxu1 %v1247_v58 }
 0x245   : > { %1070 = vmatmul.mubr.msk.f32.gmra.mrb[10].mxu1 %vm519_vm2, %v273_v39 }
 0x246   : > { %773 = vmatprep.mubr.f32.mxu1 %v1247_v58 }
 0x249   : > { %1071 = vmatmul.mubr.msk.f32.gmra.mrb[12].mxu1 %vm519_vm2, %v274_v40 }
 0x24a   : > { %779 = vmatprep.mubr.f32.mxu1 %v1247_v58 }
 0x24d   : > { %1072 = vmatmul.mubr.msk.f32.gmra.mrb[14].mxu1 %vm519_vm2, %v275_v41 }
 0x24e   : > { %861 = vmatprep.mubr.f32.mxu1 %v1247_v58  ;;  %v673_v58 = vmul.f32 %v1437_v23, %v1437_v23 }
 0x250   : > { %v681_v57 = vsub.f32 1.0, %v673_v58 }
 0x314   : > { %v763_v46 = vpop.f32.mrb[8].mxu1 }
 0x315   : > { %v786_v49 = vmul.f32 %v763_v46, %v677_v44  ;;  %v765_v50 = vpop.f32.mrb[9].mxu1 }
 0x316   : > { %v787_v51 = vmul.f32 %v765_v50, %v678_v47 }
 0x318   : > { %v769_v17 = vpop.f32.mrb[10].mxu1 }
 0x319   : > { %v788_v54 = vmul.f32 %v769_v17, %v679_v52  ;;  %v771_v55 = vpop.f32.mrb[11].mxu1 }
 0x31a   : > { %v789_v19 = vmul.f32 %v771_v55, %v680_v53 }
 0x31b   : > { %v1182_v56 = vpack.c.bf16 %v788_v54, %v786_v49 }
 0x31c   : > { %v1180_v59 = vpack.c.bf16 %v789_v19, %v787_v51  ;;  %v775_v60 = vpop.f32.mrb[12].mxu1 }
 0x31d   : > { %v790_v23 = vmul.f32 %v775_v60, %v681_v57  ;;  %v777_v63 = vpop.f32.mrb[13].mxu1 }
 0x31e   : > { %v791_v0 = vmul.f32 %v777_v63, %v682_v61  ;;  %1181 = vmatprep.subr.bf16.mxu1 %v1180_v59 }
 0x31f   : > { %1183 = vmatpush1.bf16.msra.mxu1 %v1182_v56 }
 0x320   : > { %v781_v1 = vpop.f32.mrb[14].mxu1 }
 0x321   : > { %v792_v7 = vmul.f32 %v781_v1, %v683_v24  ;;  %v783_v8 = vpop.f32.mrb[15].mxu1 }
 0x322   : > { %v793_v9 = vmul.f32 %v783_v8, %v684_v6 }
 0x323   : > { %v1186_v10 = vpack.c.bf16 %v792_v7, %v790_v23 }
 0x324   : > { %v1184_v25 = vpack.c.bf16 %v793_v9, %v791_v0 }
 0x326   : > { %1185 = vmatprep.subr.bf16.mxu1 %v1184_v25 }
 0x327   : > { %1187 = vmatpush1.bf16.msra.mxu1 %v1186_v10 }
 0x32a   : > { %1073 = vmatmul.mubr.msk.f32.vlgmr.msra.gmra.mrb[16].mxu1 %vm519_vm2, %v276_v26 }
 0x3fd   : > { %v863_v11 = vpop.f32.mrb[16].mxu1 }
 0x3fe   : > { %v865_v2 = vpop.f32.mrb[17].mxu1  ;;  %868 = vxpose.xlu0.b32.start.end [1/1] (short) %v863_v11, 128 }
 0x3ff   : > { %900 = vxpose.xlu1.b32.start.end [1/1] (short) %v865_v2, 128 }
 0x47e   : > { %v884_v4 = vpop.trf.xlu0 }
 0x47f   : > { %932 = vst.msk [vmem:[%s1514_s14] sm:$0xff] %vm297_vm0, %v884_v4  ;;  %v916_v3 = vpop.trf.xlu1 }
 0x480   : > { %948 = vst.msk [vmem:[%s1514_s14 + $0x80] sm:$0xff] %vm297_vm0, %v916_v3 }
 0x482   : > { %v885_v12 = vpop.trf.xlu0 }
 0x483   : > { %933 = vst.msk [vmem:[%s1514_s14 + $0x8] sm:$0xff] %vm297_vm0, %v885_v12  ;;  %v917_v5 = vpop.trf.xlu1 }
 0x484   : > { %949 = vst.msk [vmem:[%s1514_s14 + $0x88] sm:$0xff] %vm297_vm0, %v917_v5 }
 0x486   : > { %v886_v13 = vpop.trf.xlu0 }
 0x487   : > { %934 = vst.msk [vmem:[%s1514_s14 + $0x10] sm:$0xff] %vm297_vm0, %v886_v13  ;;  %v918_v14 = vpop.trf.xlu1 }
 0x488   : > { %950 = vst.msk [vmem:[%s1514_s14 + $0x90] sm:$0xff] %vm297_vm0, %v918_v14 }
 0x48a   : > { %v887_v15 = vpop.trf.xlu0 }
 0x48b   : > { %935 = vst.msk [vmem:[%s1514_s14 + $0x18] sm:$0xff] %vm297_vm0, %v887_v15  ;;  %v919_v16 = vpop.trf.xlu1 }
 0x48c   : > { %951 = vst.msk [vmem:[%s1514_s14 + $0x98] sm:$0xff] %vm297_vm0, %v919_v16 }
 0x48e   : > { %v888_v21 = vpop.trf.xlu0 }
 0x48f   : > { %936 = vst.msk [vmem:[%s1514_s14 + $0x20] sm:$0xff] %vm297_vm0, %v888_v21  ;;  %v920_v22 = vpop.trf.xlu1 }
 0x490   : > { %952 = vst.msk [vmem:[%s1514_s14 + $0xa0] sm:$0xff] %vm297_vm0, %v920_v22 }
 0x492   : > { %v889_v27 = vpop.trf.xlu0 }
 0x493   : > { %937 = vst.msk [vmem:[%s1514_s14 + $0x28] sm:$0xff] %vm297_vm0, %v889_v27  ;;  %v921_v28 = vpop.trf.xlu1 }
 0x494   : > { %953 = vst.msk [vmem:[%s1514_s14 + $0xa8] sm:$0xff] %vm297_vm0, %v921_v28 }
 0x496   : > { %v890_v29 = vpop.trf.xlu0 }
 0x497   : > { %938 = vst.msk [vmem:[%s1514_s14 + $0x30] sm:$0xff] %vm297_vm0, %v890_v29  ;;  %v922_v30 = vpop.trf.xlu1 }
 0x498   : > { %954 = vst.msk [vmem:[%s1514_s14 + $0xb0] sm:$0xff] %vm297_vm0, %v922_v30 }
 0x49a   : > { %v891_v31 = vpop.trf.xlu0 }
 0x49b   : > { %939 = vst.msk [vmem:[%s1514_s14 + $0x38] sm:$0xff] %vm297_vm0, %v891_v31  ;;  %v923_v32 = vpop.trf.xlu1 }
 0x49c   : > { %955 = vst.msk [vmem:[%s1514_s14 + $0xb8] sm:$0xff] %vm297_vm0, %v923_v32 }
 0x49e   : > { %v892_v33 = vpop.trf.xlu0 }
 0x49f   : > { %940 = vst.msk [vmem:[%s1514_s14 + $0x40] sm:$0xff] %vm297_vm0, %v892_v33  ;;  %v924_v34 = vpop.trf.xlu1 }
 0x4a0   : > { %956 = vst.msk [vmem:[%s1514_s14 + $0xc0] sm:$0xff] %vm297_vm0, %v924_v34 }
 0x4a2   : > { %v893_v35 = vpop.trf.xlu0 }
 0x4a3   : > { %941 = vst.msk [vmem:[%s1514_s14 + $0x48] sm:$0xff] %vm297_vm0, %v893_v35  ;;  %v925_v36 = vpop.trf.xlu1 }
 0x4a4   : > { %957 = vst.msk [vmem:[%s1514_s14 + $0xc8] sm:$0xff] %vm297_vm0, %v925_v36 }
 0x4a6   : > { %v894_v37 = vpop.trf.xlu0 }
 0x4a7   : > { %942 = vst.msk [vmem:[%s1514_s14 + $0x50] sm:$0xff] %vm297_vm0, %v894_v37  ;;  %v926_v38 = vpop.trf.xlu1 }
 0x4a8   : > { %958 = vst.msk [vmem:[%s1514_s14 + $0xd0] sm:$0xff] %vm297_vm0, %v926_v38 }
 0x4aa   : > { %v895_v39 = vpop.trf.xlu0 }
 0x4ab   : > { %943 = vst.msk [vmem:[%s1514_s14 + $0x58] sm:$0xff] %vm297_vm0, %v895_v39  ;;  %v927_v40 = vpop.trf.xlu1 }
 0x4ac   : > { %959 = vst.msk [vmem:[%s1514_s14 + $0xd8] sm:$0xff] %vm297_vm0, %v927_v40 }
 0x4ae   : > { %v896_v41 = vpop.trf.xlu0 }
 0x4af   : > { %944 = vst.msk [vmem:[%s1514_s14 + $0x60] sm:$0xff] %vm297_vm0, %v896_v41  ;;  %v928_v42 = vpop.trf.xlu1 }
 0x4b0   : > { %960 = vst.msk [vmem:[%s1514_s14 + $0xe0] sm:$0xff] %vm297_vm0, %v928_v42 }
 0x4b2   : > { %v897_v43 = vpop.trf.xlu0 }
 0x4b3   : > { %945 = vst.msk [vmem:[%s1514_s14 + $0x68] sm:$0xff] %vm297_vm0, %v897_v43  ;;  %v929_v44 = vpop.trf.xlu1 }
 0x4b4   : > { %961 = vst.msk [vmem:[%s1514_s14 + $0xe8] sm:$0xff] %vm297_vm0, %v929_v44 }
 0x4b6   : > { %v898_v45 = vpop.trf.xlu0 }
 0x4b7   : > { %946 = vst.msk [vmem:[%s1514_s14 + $0x70] sm:$0xff] %vm297_vm0, %v898_v45  ;;  %v930_v46 = vpop.trf.xlu1 }
 0x4b8   : > { %962 = vst.msk [vmem:[%s1514_s14 + $0xf0] sm:$0xff] %vm297_vm0, %v930_v46 }
 0x4ba   : > { %v899_v47 = vpop.trf.xlu0 }
 0x4bb   : > { %947 = vst.msk [vmem:[%s1514_s14 + $0x78] sm:$0xff] %vm297_vm0, %v899_v47  ;;  %v931_v48 = vpop.trf.xlu1 }
 0x4bc   : > { %963 = vst.msk [vmem:[%s1514_s14 + $0xf8] sm:$0xff] %vm297_vm0, %v931_v48 }
 0x4bd PF: > { %s15_s18 = sadd.s32 1, %s1244_s18  }
 0x4be   : > { %p12_p4 = scmp.ge.s32.totalorder %s15_s18, 4  }
 0x4c0   :  { %14 = sbr.rel (!%p12_p4) target bundleno = 1 (0x1), region = 70 }

</bundles_post_ra>
